<compile_context>
chip_gen: v5e
topology: v5e:2x2
jax: 0.10.0
libtpu: 0.0.40
codegen_flags: <defaults>
</compile_context>

<pallas_src>
import functools

import jax
import jax.numpy as jnp
from jax.experimental import pallas as pl
from jax.experimental.pallas import tpu as pltpu


def _hill_elementwise(x, y, *, lamb, margin, gamma):
    """Elementwise Hill loss, computed in f32.

    One exp(-|x-m|) is shared between log(sigmoid(x-m)) and sigmoid(x-m) so the
    single EUP slot doesn't bind; margin/gamma are static Python floats and are
    specialized at trace time.
    """
    x = x.astype(jnp.float32)
    y = y.astype(jnp.float32)
    xm = x if margin == 0.0 else x - margin

    e = jnp.exp(-jnp.abs(xm))                        # shared transcendental
    # Numerically stable log(sigmoid(xm)); identical to the reference except
    # where the reference would produce NaN via 0 * (-inf).
    log_pred_pos = jnp.minimum(xm, 0.0) - jnp.log1p(e)

    def _sigmoid_xm():
        # sigmoid(xm) rebuilt from the shared exp (exact division, no 2nd exp).
        return jnp.where(xm >= 0.0, 1.0, e) / (1.0 + e)

    if margin == 0.0:
        pred_pos = _sigmoid_xm()
        pred_neg = pred_pos                          # sigmoid(x) == sigmoid(xm)
    else:
        pred_pos = _sigmoid_xm() if gamma != 0.0 else None
        pred_neg = jax.nn.sigmoid(x)

    los_pos = y * log_pred_pos
    los_neg = (1.0 - y) * -(lamb - pred_neg) * (pred_neg * pred_neg)
    loss = -(los_pos + los_neg)

    if gamma != 0.0:                                 # static specialization
        pt = (1.0 - pred_pos) * y + (1.0 - y)
        if gamma == 1.0:
            focal = pt
        elif gamma == 2.0:
            focal = pt * pt
        else:
            focal = pt ** gamma
        loss = loss * focal
    return loss


def _hill_sum_kernel(x_ref, y_ref, out_ref, *, lamb, margin, gamma,
                     tile_rows, total_rows, n_steps, needs_mask):
    p = pl.program_id(0)        # "parallel" chunk (megacore / v7x 2-TC)
    step = pl.program_id(1)     # "arbitrary" reduction axis

    @pl.when(step == 0)
    def _():
        out_ref[...] = jnp.zeros_like(out_ref)       # out block is the accumulator

    width = x_ref.shape[-1]
    block_row0 = (p * n_steps + step) * tile_rows    # first logical row of block

    if tile_rows >= 8 and tile_rows % 8 == 0:
        # Slab-wise accumulation over 8-row slabs: keeps the live set to a few
        # (8, width) vreg tiles; the only cross-lane reduce happens in the
        # wrapper on the tiny partials array.
        n_slabs = tile_rows // 8
        row_iota = (jax.lax.broadcasted_iota(jnp.int32, (8, width), 0)
                    if needs_mask else None)

        def body(k, acc):
            r0 = pl.multiple_of(k * 8, 8)
            loss = _hill_elementwise(x_ref[pl.ds(r0, 8), :],
                                     y_ref[pl.ds(r0, 8), :],
                                     lamb=lamb, margin=margin, gamma=gamma)
            if needs_mask:
                valid = total_rows - (block_row0 + k * 8)
                loss = jnp.where(row_iota < valid, loss, 0.0)
            return acc + loss

        acc = jax.lax.fori_loop(0, n_slabs, body,
                                jnp.zeros((8, width), jnp.float32),
                                unroll=min(4, n_slabs))
        out_ref[...] += acc
    else:
        # Tiny problem: tile_rows == full row count (< 8 rows or not 8-aligned).
        loss = _hill_elementwise(x_ref[...], y_ref[...],
                                 lamb=lamb, margin=margin, gamma=gamma)
        if needs_mask:
            row_iota = jax.lax.broadcasted_iota(jnp.int32, (tile_rows, width), 0)
            loss = jnp.where(row_iota < (total_rows - block_row0), loss, 0.0)
        out_ref[:tile_rows, :] += loss


def _pick_layout(N, C):
    """Lane-dense 2-D view of the flat data when the reshape is free (no copy);
    otherwise keep the natural (N, C) layout (also no copy)."""
    total = N * C
    for w in (1024, 512, 256, 128):
        if total % w == 0:
            return total // w, w, True
    return N, C, False


def _vmem_limit_bytes():
    cap = 64 << 20                                   # conservative fallback (v7x)
    try:
        cap = int(getattr(pltpu.get_tpu_info(), "vmem_capacity_bytes", cap))
    except Exception:
        pass
    return int(min(cap * 3 // 4, 96 << 20))          # 48 MiB v7x, 96 MiB v5e/v6e


def hill_loss(logits, targets, *, lamb=1.5, margin=0.0, gamma=0.0,
              reduction='sum', target_block_bytes=None,
              cast_targets_to_bf16=False):
    """Hill loss. logits/targets: (N, C); reduction: 'sum' | 'mean'.

    Inputs may be f32 or bf16 (compute is in f32)."""
    assert logits.ndim == 2 and logits.shape == targets.shape
    if gamma < 0.0:
        raise ValueError("gamma must be >= 0 (pt can be exactly 0).")
    N, C = logits.shape

    rows, width, lane_dense = _pick_layout(N, C)
    if lane_dense:
        x2d = logits.reshape(rows, width)            # free contiguous reshape
        y2d = targets.reshape(rows, width)
    else:
        x2d, y2d = logits, targets                   # natural layout, no copies
    if cast_targets_to_bf16 and y2d.dtype == jnp.float32:
        # Only a win when the convert fuses with the upstream producer of
        # `targets` (halves that HBM stream); standalone it adds traffic.
        y2d = y2d.astype(jnp.bfloat16)

    vmem_limit = _vmem_limit_bytes()
    if target_block_bytes is None:
        # ~6 MiB/input on v7x, ~12 MiB on v5e/v6e: 2 inputs x 2 buffers fits.
        target_block_bytes = max(1 << 20, vmem_limit // 8)

    x_item = jnp.dtype(x2d.dtype).itemsize
    y_item = jnp.dtype(y2d.dtype).itemsize
    sub = {4: 8, 2: 16, 1: 32}.get(min(x_item, y_item), 8)   # packed sublane align

    if rows <= sub:
        tile_rows = rows
    else:
        max_rows = max(sub, (target_block_bytes //
                             (width * max(x_item, y_item))) // sub * sub)
        tile_rows = min(max_rows, (rows // sub) * sub)

    n_blocks = -(-rows // tile_rows)
    num_parallel = 2 if n_blocks >= 2 else 1          # leading axis for v7x 2 TCs
    n_steps = -(-n_blocks // num_parallel)
    needs_mask = (num_parallel * n_steps * tile_rows) != rows

    if num_parallel * n_steps == n_blocks:
        in_idx = lambda p, i: (p * n_steps + i, 0)
    else:
        # Phantom trailing step on the last chunk: clamp its DMA to the last
        # real block; the kernel masks its contribution to exactly zero.
        last = n_blocks - 1
        in_idx = lambda p, i: (jnp.minimum(p * n_steps + i, last), 0)

    out_rows = 8 if (tile_rows % 8 == 0 and tile_rows >= 8) else (-(-tile_rows // 8) * 8)

    kernel = functools.partial(
        _hill_sum_kernel, lamb=float(lamb), margin=float(margin),
        gamma=float(gamma), tile_rows=tile_rows, total_rows=rows,
        n_steps=n_steps, needs_mask=needs_mask)

    partials = pl.pallas_call(
        kernel,
        out_shape=jax.ShapeDtypeStruct((num_parallel * out_rows, width), jnp.float32),
        grid_spec=pltpu.PrefetchScalarGridSpec(
            num_scalar_prefetch=0,
            grid=(num_parallel, n_steps),
            in_specs=[pl.BlockSpec((tile_rows, width), in_idx),
                      pl.BlockSpec((tile_rows, width), in_idx)],
            out_specs=pl.BlockSpec((out_rows, width), lambda p, i: (p, 0)),
        ),
        # TODO(synk): if plain "parallel" does not shard the leading axis across
        # v7x's two TensorCores on this toolchain, switch it to pltpu.CORE_PARALLEL.
        compiler_params=pltpu.CompilerParams(
            dimension_semantics=("parallel", "arbitrary"),
            vmem_limit_bytes=vmem_limit,
        ),
    )(x2d, y2d)

    total_loss = partials.sum()      # single tiny cross-lane/sublane reduction
    if reduction == 'mean':
        return total_loss / (N * C)
    if reduction == 'sum':
        return total_loss
    raise NotImplementedError(
        "reduction='none' not exposed via the reduction kernel")
    # TODO(synk): add a 'none' variant returning the full (N, C) loss map.


def hill_loss_ref(logits, targets, *, lamb=1.5, margin=0.0, gamma=0.0,
                  reduction='sum'):
    """Pure-JAX reference matching the PyTorch forward."""
    logits = logits.astype(jnp.float32)
    targets = targets.astype(jnp.float32)
    logits_margin = logits - margin
    pred_pos = jax.nn.sigmoid(logits_margin)
    pred_neg = jax.nn.sigmoid(logits)
    pt = (1 - pred_pos) * targets + (1 - targets)
    focal_weight = pt ** gamma
    los_pos = targets * jnp.log(pred_pos)
    los_neg = (1 - targets) * -(lamb - pred_neg) * pred_neg ** 2
    loss = -(los_pos + los_neg) * focal_weight
    if reduction == 'mean':
        return loss.mean()
    elif reduction == 'sum':
        return loss.sum()
    return loss


if __name__ == "__main__":
    key = jax.random.PRNGKey(0)
    k1, k2, k3, k4, k5, k6 = jax.random.split(key, 6)

    def check(out, ref, rtol, atol, name):
        assert jnp.allclose(out, ref, rtol=rtol, atol=atol), (name, out, ref)

    # 1) Small multi-label problem, default config (lamb=1.5, margin=0, gamma=0).
    N, C = 16, 32
    logits = jax.random.normal(k1, (N, C), dtype=jnp.float32)
    targets = (jax.random.uniform(k2, (N, C)) > 0.7).astype(jnp.float32)
    out = jax.block_until_ready(hill_loss(logits, targets))
    check(out, hill_loss_ref(logits, targets), 1e-5, 1e-4, "default")

    # 2) margin + focal weighting + mean reduction.
    out2 = jax.block_until_ready(
        hill_loss(logits, targets, lamb=1.5, margin=1.0, gamma=2.0,
                  reduction='mean'))
    check(out2, hill_loss_ref(logits, targets, lamb=1.5, margin=1.0, gamma=2.0,
                              reduction='mean'), 1e-5, 1e-5, "margin+focal")

    # 3) Lane-dense slab-loop path (rows multiple of 8, no masking needed).
    N3, C3 = 256, 128
    l3 = jax.random.normal(k3, (N3, C3), dtype=jnp.float32)
    t3 = (jax.random.uniform(k4, (N3, C3)) > 0.8).astype(jnp.float32)
    out3 = jax.block_until_ready(hill_loss(l3, t3))
    check(out3, hill_loss_ref(l3, t3), 1e-4, 1e-2, "slab-loop")

    # 4) Natural-layout path with a ragged last block + both parallel chunks.
    N4, C4 = 33, 100
    l4 = jax.random.normal(k5, (N4, C4), dtype=jnp.float32)
    t4 = (jax.random.uniform(k6, (N4, C4)) > 0.7).astype(jnp.float32)
    out4 = jax.block_until_ready(hill_loss(l4, t4, margin=0.5, gamma=2.0))
    check(out4, hill_loss_ref(l4, t4, margin=0.5, gamma=2.0), 1e-4, 1e-2, "ragged")

    print("KERNEL_OK")
</pallas_src>

<mosaic_0001>
module attributes {stable_mosaic.version = 11 : i64} {
  func.func @_hill_sum_kernel(%arg0: i32, %arg1: i32, %arg2: memref<1x512xf32, #tpu.memory_space<vmem>>, %arg3: memref<1x512xf32, #tpu.memory_space<vmem>>, %arg4: memref<8x512xf32, #tpu.memory_space<vmem>>) attributes {dimension_semantics = [#tpu.dimension_semantics<parallel>, #tpu.dimension_semantics<arbitrary>], iteration_bounds = array<i64: 1, 1>, scalar_prefetch = 0 : i64, scratch_operands = 0 : i64, tpu.core_type = #tpu.core_type<tc>, window_params = [{transform_indices = @transform_0, window_bounds = array<i64: 1, 512>}, {transform_indices = @transform_1, window_bounds = array<i64: 1, 512>}, {transform_indices = @transform_2, window_bounds = array<i64: 8, 512>}]} {
    %c0_i32 = arith.constant 0 : i32
    %0 = arith.cmpi eq, %arg1, %c0_i32 : i32
    %1 = arith.extui %0 : i1 to i32
    %c0_i32_0 = arith.constant 0 : i32
    %2 = arith.cmpi ne, %1, %c0_i32_0 : i32
    scf.if %2 {
      %cst_16 = arith.constant 0.000000e+00 : f32
      %36 = vector.broadcast %cst_16 : f32 to vector<8x512xf32>
      %c0_17 = arith.constant 0 : index
      %c0_18 = arith.constant 0 : index
      %37 = vector.load %arg4[%c0_17, %c0_18] : memref<8x512xf32, #tpu.memory_space<vmem>>, vector<8x512xf32>
      tpu.vector_store %arg4[%c0_17, %c0_18], %36 {strides = array<i32>} : memref<8x512xf32, #tpu.memory_space<vmem>>, vector<8x512xf32>,
    } else {
    }
    %c0 = arith.constant 0 : index
    %c0_1 = arith.constant 0 : index
    %3 = vector.load %arg2[%c0, %c0_1] : memref<1x512xf32, #tpu.memory_space<vmem>>, vector<1x512xf32>
    %c0_2 = arith.constant 0 : index
    %c0_3 = arith.constant 0 : index
    %4 = vector.load %arg3[%c0_2, %c0_3] : memref<1x512xf32, #tpu.memory_space<vmem>>, vector<1x512xf32>
    %5 = math.absf %3 : vector<1x512xf32>
    %cst = arith.constant 0.000000e+00 : f32
    %6 = vector.broadcast %cst : f32 to vector<1x512xf32>
    %7 = arith.subf %6, %5 : vector<1x512xf32>
    %8 = math.exp %7 : vector<1x512xf32>
    %cst_4 = arith.constant 0.000000e+00 : f32
    %9 = vector.broadcast %cst_4 : f32 to vector<1x512xf32>
    %10 = arith.minimumf %3, %9 : vector<1x512xf32>
    %11 = math.log1p %8 : vector<1x512xf32>
    %12 = arith.subf %10, %11 : vector<1x512xf32>
    %cst_5 = arith.constant 0.000000e+00 : f32
    %13 = vector.broadcast %cst_5 : f32 to vector<1x512xf32>
    %14 = arith.cmpf oge, %3, %13 : vector<1x512xf32>
    %cst_6 = arith.constant 1.000000e+00 : f32
    %15 = vector.broadcast %cst_6 : f32 to vector<1x512xf32>
    %16 = arith.select %14, %15, %8 : vector<1x512xi1>, vector<1x512xf32>
    %cst_7 = arith.constant 1.000000e+00 : f32
    %17 = vector.broadcast %cst_7 : f32 to vector<1x512xf32>
    %18 = arith.addf %17, %8 : vector<1x512xf32>
    %19 = arith.divf %16, %18 : vector<1x512xf32>
    %20 = arith.mulf %4, %12 : vector<1x512xf32>
    %cst_8 = arith.constant 1.000000e+00 : f32
    %21 = vector.broadcast %cst_8 : f32 to vector<1x512xf32>
    %22 = arith.subf %21, %4 : vector<1x512xf32>
    %cst_9 = arith.constant 1.500000e+00 : f32
    %23 = vector.broadcast %cst_9 : f32 to vector<1x512xf32>
    %24 = arith.subf %23, %19 : vector<1x512xf32>
    %cst_10 = arith.constant 0.000000e+00 : f32
    %25 = vector.broadcast %cst_10 : f32 to vector<1x512xf32>
    %26 = arith.subf %25, %24 : vector<1x512xf32>
    %27 = arith.mulf %22, %26 : vector<1x512xf32>
    %28 = arith.mulf %19, %19 : vector<1x512xf32>
    %29 = arith.mulf %27, %28 : vector<1x512xf32>
    %30 = arith.addf %20, %29 : vector<1x512xf32>
    %cst_11 = arith.constant 0.000000e+00 : f32
    %31 = vector.broadcast %cst_11 : f32 to vector<1x512xf32>
    %32 = arith.subf %31, %30 : vector<1x512xf32>
    %c0_12 = arith.constant 0 : index
    %c0_13 = arith.constant 0 : index
    %33 = vector.load %arg4[%c0_12, %c0_13] : memref<8x512xf32, #tpu.memory_space<vmem>>, vector<1x512xf32>
    %34 = arith.addf %33, %32 : vector<1x512xf32>
    %c0_14 = arith.constant 0 : index
    %c0_15 = arith.constant 0 : index
    %35 = vector.load %arg4[%c0_14, %c0_15] : memref<8x512xf32, #tpu.memory_space<vmem>>, vector<1x512xf32>
    tpu.vector_store %arg4[%c0_14, %c0_15], %34 {strides = array<i32>} : memref<8x512xf32, #tpu.memory_space<vmem>>, vector<1x512xf32>,
    return
  }
  func.func @transform_0(%arg0: i32, %arg1: i32) -> (i32, i32) {
    %c1_i32 = arith.constant 1 : i32
    %0 = arith.muli %arg0, %c1_i32 : i32
    %1 = arith.addi %0, %arg1 : i32
    %c0_i32 = arith.constant 0 : i32
    %c0_i32_0 = arith.constant 0 : i32
    return %1, %c0_i32 : i32, i32
  }
  func.func @transform_1(%arg0: i32, %arg1: i32) -> (i32, i32) {
    %c1_i32 = arith.constant 1 : i32
    %0 = arith.muli %arg0, %c1_i32 : i32
    %1 = arith.addi %0, %arg1 : i32
    %c0_i32 = arith.constant 0 : i32
    %c0_i32_0 = arith.constant 0 : i32
    return %1, %c0_i32 : i32, i32
  }
  func.func @transform_2(%arg0: i32, %arg1: i32) -> (i32, i32) {
    %c0_i32 = arith.constant 0 : i32
    %c0_i32_0 = arith.constant 0 : i32
    return %arg0, %c0_i32 : i32, i32
  }
}

</mosaic_0001>

<bundles_post_ra>
// kernel: tpu_custom_call.1
= control target key start
LH: loop header
LB: loop body
LE: loop exit
PB: predicated region body
PF: predicated region fallthrough
CT: control target
= control target key end

     0   :  { %7 = vsyncpa [#allocation3], 0  ;;  %s242_s0 = inlined_call_operand.hbm [shape: f32[1,512], index: 0, kind: input, shape index: {}]   ;;  %s243_s1 = inlined_call_operand.hbm [shape: f32[1,512], index: 1, kind: input, shape index: {}]   ;;  %s244_s2 = inlined_call_operand.hbm [shape: f32[8,512], index: 2, kind: output, shape index: {}]  }
   0x1   :  { %8 = vsyncpa [#allocation6], 0 }
   0x2   :  { %9 = vsyncpa [#allocation4], 0  ;;  %s18_s11 = sshll.u32 %s242_s0, 4  ;;  %s214_s12 = smov [#allocation2]   ;;  %s19_s11 = int_to_ptr.hbm [resolvable:$true] %s18_s11 }
   0x3   :  { %s20_s13 = sshll.u32 %s214_s12, 4  ;;  %s32_s16 = sshll.u32 %s243_s1, 4  ;;  %s21_s13 = int_to_ptr.vmem [resolvable:$true] %s20_s13  ;;  %s33_s16 = int_to_ptr.hbm [resolvable:$true] %s32_s16 }
   0x4   :  { %23 = dma.hbm_to_vmem [thread:$0]  %s19_s11, 64, %s21_s13, [#allocation3]  }
   0x5   :  { %s215_s17 = smov [#allocation5]  }
   0x6   :  { %s34_s18 = sshll.u32 %s215_s17, 4  ;;  %s35_s18 = int_to_ptr.vmem [resolvable:$true] %s34_s18 }
   0x7   :  { %37 = dma.hbm_to_vmem [thread:$0]  %s33_s16, 64, %s35_s18, [#allocation6]  }
   0x8   :  { %208 = dma.done.wait [#allocation3], 64  }
   0x9   :  { %209 = vsyncadd [#allocation3], 4294967232 }
   0xa   :  { %210 = dma.done.wait [#allocation6], 64  }
   0xb   :  { %211 = vsyncadd [#allocation6], 4294967232  ;;  %v216_v0 = vmov 0.0   ;;  %v56_v1 = vld [vmem:[#allocation2] sm:$0xf]  ;;  %v102_v36 = vlaneseq  ;;  %s217_s0 = smov [#allocation7]  }
   0xc   :  { %52 = vst [vmem:[#allocation7] sm:$0xff] %v216_v0  ;;  %v58_v2 = vand.u32 2147483647, %v56_v1  ;;  %vm73_vm2 = vcmp.ge.f32.partialorder %v56_v1, 0.0  ;;  %v62_v22 = vmin.f32 %v56_v1, 0.0  ;;  %s113_s1 = sshll.u32 %s217_s0, 4  ;;  %s114_s1 = int_to_ptr.vmem [resolvable:$true] %s113_s1 }
   0xd   :  { %53 = vst [vmem:[#allocation7 + $0x8] sm:$0xff] %v216_v0  ;;  %v57_v24 = vld [vmem:[#allocation5] sm:$0xf]  ;;  %s115_s21 = sshll.u32 %s244_s2, 4  ;;  %vm104_vm6 = vcmp.lt.s32.totalorder %v102_v36, 512  ;;  %s116_s21 = int_to_ptr.hbm [resolvable:$true] %s115_s21 }
   0xe   :  { %54 = vst [vmem:[#allocation7 + $0x10] sm:$0xff] %v216_v0  ;;  %v59_v3 = vsub.f32 0.0, %v58_v2  ;;  %v92_v29 = vsub.f32 1.0, %v57_v24 }
   0xf   :  { %55 = vst [vmem:[#allocation7 + $0x18] sm:$0xff] %v216_v0 }
  0x10   :  { %v60_v4 = vmul.f32 1.442695, %v59_v3 }
  0x12   :  { %130 = vpow2.f32 %v60_v4 }
  0x16   :  { %v100_v38 = vld [vmem:[#allocation7] ss:$8 sm:$0xf] }
  0x18   :  { %v131_v5 = vpop.eup %130 }
  0x19   :  { %v63_v6 = vadd.f32 1.0, %v131_v5  ;;  %v66_v7 = vmul.f32 -0.5, %v131_v5  ;;  %v69_v11 = vand.u32 2147483647, %v131_v5  ;;  %v74_v21 = vsel %vm73_vm2, 1.0, %v131_v5 }
  0x1b   :  { %132 = vrcp.f32 %v63_v6  ;;  %v67_v10 = vadd.f32 1.0, %v66_v7  ;;  %v87_v12 = vand.u32 2147483648, %v63_v6  ;;  %vm81_vm0 = vweird.f32 %v63_v6 }
  0x1c   :  { %134 = vlog2.f32 %v63_v6  ;;  %v85_v15 = vand.u32 2147483647, %v63_v6  ;;  %vm70_vm4 = vcmp.lt.f32.partialorder %v69_v11, 0.0004427343 }
  0x1d   :  { %v68_v18 = vmul.f32 %v131_v5, %v67_v10  ;;  %v88_v19 = vor.u32 1.1754944e-38, %v87_v12 }
  0x1e   :  { %vm86_vm5 = vcmp.eq.f32.partialorder %v85_v15, 8.507059e+37 }
  0x21   :  { %v133_v8 = vpop.eup %132 }
  0x22   :  { %v77_v9 = vmul.f32 %v133_v8, %v63_v6  ;;  %v135_v13 = vpop.eup %134  ;;  %vm82_vm1 = vweird.f32 %v133_v8 }
  0x23   :  { %v65_v17 = vmul.f32 0.6931472, %v135_v13  ;;  %vm83_vm3 = vmor %vm81_vm0, %vm82_vm1 }
  0x24   :  { %v78_v14 = vsub.f32 1.0, %v77_v9 }
  0x25   :  { %v71_v25 = vsel %vm70_vm4, %v68_v18, %v65_v17 }
  0x26   :  { %v79_v16 = vmul.f32 %v133_v8, %v78_v14  ;;  %v72_v28 = vsub.f32 %v62_v22, %v71_v25 }
  0x28   :  { %v80_v20 = vadd.f32 %v133_v8, %v79_v16  ;;  %v91_v33 = vmul.f32 %v72_v28, %v57_v24 }
  0x2a   :  { %v84_v23 = vsel %vm83_vm3, %v133_v8, %v80_v20 }
  0x2b   :  { %v89_v26 = vsel %vm86_vm5, %v88_v19, %v84_v23 }
  0x2c   :  { %v90_v27 = vmul.f32 %v89_v26, %v74_v21 }
  0x2e   :  { %v93_v30 = vsub.f32 1.5, %v90_v27  ;;  %v96_v32 = vmul.f32 %v90_v27, %v90_v27 }
  0x30   :  { %v94_v31 = vsub.f32 0.0, %v93_v30 }
  0x32   :  { %v95_v34 = vmul.f32 %v94_v31, %v92_v29 }
  0x34   :  { %v97_v35 = vmul.f32 %v96_v32, %v95_v34 }
  0x36   :  { %v98_v37 = vadd.f32 %v97_v35, %v91_v33 }
  0x38   :  { %v99_v39 = vsub.f32 0.0, %v98_v37 }
  0x3a   :  { %v101_v40 = vadd.f32 %v100_v38, %v99_v39 }
  0x3c   :  { %106 = vst.msk [vmem:[#allocation7] ss:$8 sm:$0xf] %vm104_vm6, %v101_v40 }
  0x3d   :  { %118 = dma.vmem_to_hbm [thread:$0]  %s114_s1, 512, %s116_s21, [#allocation4]  }
  0x3e   :  { %212 = dma.done.wait [#allocation4], 512  }
  0x3f   :  { %213 = vsyncadd [#allocation4], 4294966784 }
  0x40   :  { %123 = vsyncpa [#allocation3], 1 }
  0x41   :  { %124 = vsyncpa [#allocation6], 1 }
  0x42   :  { %125 = vsyncpa [#allocation4], 1 }

</bundles_post_ra>
